<compile_context>
chip_gen: v7x
topology: tpu7x:2x2x1
jax: 0.10.0
libtpu: 0.0.40
codegen_flags: <defaults>
</compile_context>

<pallas_src>
import functools
import numpy as np
import jax
import jax.numpy as jnp
from jax.experimental import pallas as pl
from jax.experimental.pallas import tpu as pltpu


# ----------------------------- activations ---------------------------------
def _apply_activation(name, x):
    # Activation math stays in f32 (input `x` is the f32 matmul accumulator).
    if name == "relu":
        return jnp.maximum(x, 0.0)
    if name == "elu":
        return jnp.where(x > 0, x, jnp.exp(x) - 1.0)
    if name == "tanh":
        return jnp.tanh(x)
    if name == "leaky_relu":
        return jnp.where(x > 0, x, 0.01 * x)
    if name == "sigmoid":
        return jax.nn.sigmoid(x)
    if name == "selu":
        alpha = 1.6732632423543772
        scale = 1.0507009873554805
        return scale * jnp.where(x > 0, x, alpha * (jnp.exp(x) - 1.0))
    if name == "softplus":
        return jax.nn.softplus(x)
    if name == "identity":
        return x
    raise NotImplementedError(name)


# ------------------------------- kernel -------------------------------------
def _dense_decoder_kernel(*refs, n_layers, activation, matmul_dtype):
    # refs = (x_ref, w0, b0, w1, b1, ..., w_out, b_out, o_ref)
    x_ref = refs[0]
    o_ref = refs[-1]
    p = refs[1:-1]

    # Load at native dtype, cast straight to the matmul operand dtype
    # (no f32 round-trip for the input tile).
    h = x_ref[...].astype(matmul_dtype)

    # Hidden layers (statically unrolled).  Weights are already matmul_dtype
    # and biases already f32 (pre-cast in the wrapper): no per-step casts here.
    for i in range(n_layers):
        w = p[2 * i][...]
        b = p[2 * i + 1][...]
        z = jnp.dot(h, w, preferred_element_type=jnp.float32) + b
        h = _apply_activation(activation, z).astype(matmul_dtype)

    # Final projection (columns padded to a lane-dense multiple of 128).
    w = p[2 * n_layers][...]
    b = p[2 * n_layers + 1][...]
    out = jnp.dot(h, w, preferred_element_type=jnp.float32) + b
    o_ref[...] = out.astype(o_ref.dtype)


# ------------------------------- helpers -------------------------------------
def _round_up(x, m):
    return ((x + m - 1) // m) * m


def _tpu_vmem_and_kind():
    kind = ""
    try:
        kind = jax.devices()[0].device_kind.lower()
    except Exception:
        pass
    cap = None
    try:
        cap = int(pltpu.get_tpu_info().vmem_capacity_bytes)
    except Exception:
        cap = None
    if cap is None or cap <= 0:
        cap = (64 << 20) if "v7" in kind else (128 << 20)
    return cap, kind


# ------------------------------- wrapper -------------------------------------
def dense_decoder_forward(features, params, *, n_layers, activation, dist,
                          output_shape, batch_tile=None, matmul_in_bf16=None):
    """features: [B, input_size]; params: list [(W, b), ...], W [in, out], b [1, out].

    Returns the distribution parameters (mean for 'normal', logits for
    'binary', raw output for 'none') of shape [B, prod(output_shape)].
    """
    B, F = features.shape
    out_dim = int(np.prod(output_shape))
    dims = [F] + [w.shape[1] for (w, _) in params]          # layer widths
    assert len(params) == n_layers + 1 and dims[-1] == out_dim

    # bf16 matmul operands when every contraction width is MXU-wide enough.
    # NOTE: f32 accumulation always; enabling bf16 loosens agreement with an
    # f32 reference — pass matmul_in_bf16=False to force full f32.
    if matmul_in_bf16 is None:
        matmul_in_bf16 = min(w.shape[0] for (w, _) in params) >= 128
    matmul_dtype = jnp.bfloat16 if matmul_in_bf16 else jnp.float32

    # Lane-dense output: pad final-layer columns to a multiple of 128.
    out_pad = max(128, _round_up(out_dim, 128))

    # Pre-cast (and pad) parameters ONCE here — the kernel does no casts.
    prepared = []
    for li, (w, b) in enumerate(params):
        w = w.astype(matmul_dtype)
        b = b.reshape(1, -1).astype(jnp.float32)
        if li == n_layers and out_pad != out_dim:
            w = jnp.pad(w, ((0, 0), (0, out_pad - out_dim)))
            b = jnp.pad(b, ((0, 0), (0, out_pad - out_dim)))
        prepared.append((w, b))
    flat_params = [a for wb in prepared for a in wb]
    param_bytes = int(sum(w.size * w.dtype.itemsize + b.size * b.dtype.itemsize
                          for (w, b) in prepared))

    # ---- per-generation VMEM budget and batch-tile sizing ----
    vmem_cap, device_kind = _tpu_vmem_and_kind()
    if vmem_cap <= (64 << 20):
        # v7x-class: 64 MiB per TensorCore; leave headroom for compiler scratch
        vmem_budget = 48 << 20
    else:
        # v5e / v6e: 128 MiB physical VMEM
        vmem_budget = min(int(vmem_cap * 0.8), 104 << 20)

    x_itemsize = features.dtype.itemsize
    row_align = {4: 8, 2: 16, 1: 32}.get(x_itemsize, 8)
    units_max = max(max(dims), out_pad)
    # Per-row VMEM: double-buffered input/output tiles + a few live f32 temps.
    per_row = 2 * (F + out_pad) * x_itemsize + 3 * units_max * 4
    bt_cap = (vmem_budget - 2 * param_bytes - (8 << 20)) // per_row
    bt_cap = int(max(row_align, min(bt_cap, 4096)))
    bt_cap = (bt_cap // row_align) * row_align

    bt = bt_cap if batch_tile is None else min(int(batch_tile), bt_cap)
    bt = max(row_align, min(bt, _round_up(B, row_align)))
    bt = _round_up(bt, row_align)
    # On v7x (2 TensorCores) make sure the parallel batch grid has >= 2 steps.
    Bp0 = _round_up(B, row_align)
    if ("v7" in device_kind) and Bp0 >= 2 * row_align and pl.cdiv(Bp0, bt) < 2:
        bt = _round_up(pl.cdiv(Bp0, 2), row_align)
    Bp = _round_up(B, bt)

    x = features
    if Bp != B:
        # Zero-pad extra rows; they flow through the MLP harmlessly and are
        # sliced off below.
        x = jnp.pad(features, ((0, Bp - B), (0, 0)))

    kernel = functools.partial(
        _dense_decoder_kernel, n_layers=n_layers, activation=activation,
        matmul_dtype=matmul_dtype)

    # ---- cost estimate for XLA scheduling around this custom call ----
    dims_p = [F] + [w.shape[1] for (w, _) in prepared]
    flops = int(2 * Bp * sum(dims_p[i] * dims_p[i + 1]
                             for i in range(len(dims_p) - 1)))
    transcendentals = (int(Bp * sum(dims_p[1:-1]))
                       if activation in ("elu", "selu", "softplus",
                                         "sigmoid", "tanh") else 0)
    bytes_accessed = int(Bp * F * x_itemsize + Bp * out_pad * x_itemsize
                         + param_bytes)
    cost = pl.CostEstimate(flops=flops, transcendentals=transcendentals,
                           bytes_accessed=bytes_accessed)

    def _run(param_pipeline_mode):
        in_specs = [pl.BlockSpec((bt, F), lambda i: (i, 0))]
        for (w, b) in prepared:
            # Constant index_maps -> parameters fetched once, VMEM-resident.
            if param_pipeline_mode is None:
                in_specs.append(pl.BlockSpec(w.shape, lambda i: (0, 0)))
                in_specs.append(pl.BlockSpec(b.shape, lambda i: (0, 0)))
            else:
                in_specs.append(pl.BlockSpec(w.shape, lambda i: (0, 0),
                                             pipeline_mode=param_pipeline_mode))
                in_specs.append(pl.BlockSpec(b.shape, lambda i: (0, 0),
                                             pipeline_mode=param_pipeline_mode))
        return pl.pallas_call(
            kernel,
            out_shape=jax.ShapeDtypeStruct((Bp, out_pad), features.dtype),
            grid_spec=pltpu.PrefetchScalarGridSpec(
                num_scalar_prefetch=0,
                grid=(Bp // bt,),
                in_specs=in_specs,
                out_specs=pl.BlockSpec((bt, out_pad), lambda i: (i, 0)),
            ),
            compiler_params=pltpu.CompilerParams(
                dimension_semantics=("parallel",),
                vmem_limit_bytes=int(vmem_budget)),
            cost_estimate=cost,
        )(x, *flat_params)

    # Invariant params never change block -> single-buffer them (halves their
    # resident VMEM).  Fall back if this jax build rejects pipeline_mode here.
    single_buf = pl.Buffered(1) if hasattr(pl, "Buffered") else None
    try:
        out = _run(single_buf)
    except Exception:
        out = _run(None)

    out = out[:B, :out_dim]

    # TODO(synk): torch.distributions.Independent(Normal/Bernoulli) wrapper has
    # no Pallas equivalent; we return the distribution parameters `out`.
    if dist in ("normal", "binary", "none"):
        return out
    raise NotImplementedError(dist)


# --------------------------- param construction ------------------------------
def init_dense_decoder_params(key, input_size, units, n_layers, output_shape,
                              dtype=jnp.float32):
    """Deterministic synthetic params.  W: [in, out], b: [1, out]."""
    out_dim = int(np.prod(output_shape))
    dims = [input_size] + [units] * n_layers + [out_dim]
    params = []
    for i in range(len(dims) - 1):
        key, kw, kb = jax.random.split(key, 3)
        fan_in = dims[i]
        w = jax.random.normal(kw, (dims[i], dims[i + 1]), dtype) / jnp.sqrt(fan_in)
        b = 0.01 * jax.random.normal(kb, (1, dims[i + 1]), dtype)
        params.append((w, b))
    return params


# ------------------------------ reference ------------------------------------
def dense_decoder_ref(features, params, *, n_layers, activation):
    h = features.astype(jnp.float32)
    for i in range(n_layers):
        w, b = params[i]
        h = _apply_activation(activation, h @ w + b)
    w, b = params[n_layers]
    return (h @ w + b).astype(features.dtype)


# --------------------------------- main ---------------------------------------
if __name__ == "__main__":
    # Shapes consistent with DenseDecoder(stoch_size=8, deter_size=24,
    # output_shape=(16,), n_layers=2, units=32, activation='elu', dist='normal')
    stoch_size = 8
    deter_size = 24
    output_shape = (16,)
    n_layers = 2
    units = 32
    activation = "elu"
    dist = "normal"

    input_size = stoch_size + deter_size  # discrete=False, action_size=None
    key = jax.random.PRNGKey(0)
    params = init_dense_decoder_params(
        key, input_size, units, n_layers, output_shape)

    # Case 1: tiny batch (tile clamps to the batch; exercises the lane-dense
    # padded-output path since out_dim=16 < 128).
    key, kf1 = jax.random.split(key)
    feats_small = jax.random.normal(kf1, (8, input_size), jnp.float32)
    out_small = dense_decoder_forward(
        feats_small, params, n_layers=n_layers, activation=activation,
        dist=dist, output_shape=output_shape)
    out_small = jax.block_until_ready(out_small)
    ref_small = dense_decoder_ref(feats_small, params, n_layers=n_layers,
                                  activation=activation)
    assert out_small.shape == (8, int(np.prod(output_shape)))
    np.testing.assert_allclose(np.asarray(out_small), np.asarray(ref_small),
                               rtol=1e-5, atol=1e-5)

    # Case 2: non-multiple batch exercising row padding and a multi-step
    # parallel grid with a small explicit tile.
    key, kf2 = jax.random.split(key)
    feats_big = jax.random.normal(kf2, (200, input_size), jnp.float32)
    out_big = dense_decoder_forward(
        feats_big, params, n_layers=n_layers, activation=activation,
        dist=dist, output_shape=output_shape, batch_tile=64)
    out_big = jax.block_until_ready(out_big)
    ref_big = dense_decoder_ref(feats_big, params, n_layers=n_layers,
                                activation=activation)
    assert out_big.shape == (200, int(np.prod(output_shape)))
    np.testing.assert_allclose(np.asarray(out_big), np.asarray(ref_big),
                               rtol=1e-5, atol=1e-5)

    print("KERNEL_OK")
</pallas_src>

<mosaic_0001>
module attributes {stable_mosaic.version = 11 : i64} {
  func.func @_dense_decoder_kernel(%arg0: i32, %arg1: memref<8x32xf32, #tpu.memory_space<vmem>>, %arg2: memref<32x32xf32, #tpu.memory_space<vmem>>, %arg3: memref<1x32xf32, #tpu.memory_space<vmem>>, %arg4: memref<32x32xf32, #tpu.memory_space<vmem>>, %arg5: memref<1x32xf32, #tpu.memory_space<vmem>>, %arg6: memref<32x128xf32, #tpu.memory_space<vmem>>, %arg7: memref<1x128xf32, #tpu.memory_space<vmem>>, %arg8: memref<8x128xf32, #tpu.memory_space<vmem>>) attributes {dimension_semantics = [#tpu.dimension_semantics<parallel>], iteration_bounds = array<i64: 1>, scalar_prefetch = 0 : i64, scratch_operands = 0 : i64, tpu.core_type = #tpu.core_type<tc>, window_params = [{transform_indices = @transform_0, window_bounds = array<i64: 8, 32>}, {pipeline_mode = #tpu.pipeline_mode<synchronous>, transform_indices = @transform_1, window_bounds = array<i64: 32, 32>}, {pipeline_mode = #tpu.pipeline_mode<synchronous>, transform_indices = @transform_2, window_bounds = array<i64: 1, 32>}, {pipeline_mode = #tpu.pipeline_mode<synchronous>, transform_indices = @transform_3, window_bounds = array<i64: 32, 32>}, {pipeline_mode = #tpu.pipeline_mode<synchronous>, transform_indices = @transform_4, window_bounds = array<i64: 1, 32>}, {pipeline_mode = #tpu.pipeline_mode<synchronous>, transform_indices = @transform_5, window_bounds = array<i64: 32, 128>}, {pipeline_mode = #tpu.pipeline_mode<synchronous>, transform_indices = @transform_6, window_bounds = array<i64: 1, 128>}, {transform_indices = @transform_7, window_bounds = array<i64: 8, 128>}]} {
    %c0 = arith.constant 0 : index
    %c0_0 = arith.constant 0 : index
    %0 = vector.load %arg1[%c0, %c0_0] : memref<8x32xf32, #tpu.memory_space<vmem>>, vector<8x32xf32>
    %c0_1 = arith.constant 0 : index
    %c0_2 = arith.constant 0 : index
    %1 = vector.load %arg2[%c0_1, %c0_2] : memref<32x32xf32, #tpu.memory_space<vmem>>, vector<32x32xf32>
    %c0_3 = arith.constant 0 : index
    %c0_4 = arith.constant 0 : index
    %2 = vector.load %arg3[%c0_3, %c0_4] : memref<1x32xf32, #tpu.memory_space<vmem>>, vector<1x32xf32>
    %cst = arith.constant dense<0.000000e+00> : vector<8x32xf32>
    %3 = tpu.matmul %0, %1, %cst {dimension_numbers = #tpu.dot_dimension_numbers<[1], [0], [0], [1], [0, 0, 1, 1], [], []>} : vector<8x32xf32>, vector<32x32xf32>, vector<8x32xf32> -> vector<8x32xf32>
    %4 = vector.broadcast %2 : vector<1x32xf32> to vector<8x32xf32>
    %5 = arith.addf %3, %4 : vector<8x32xf32>
    %cst_5 = arith.constant 0.000000e+00 : f32
    %6 = vector.broadcast %cst_5 : f32 to vector<8x32xf32>
    %7 = arith.cmpf ogt, %5, %6 : vector<8x32xf32>
    %8 = math.exp %5 : vector<8x32xf32>
    %cst_6 = arith.constant 1.000000e+00 : f32
    %9 = vector.broadcast %cst_6 : f32 to vector<8x32xf32>
    %10 = arith.subf %8, %9 : vector<8x32xf32>
    %11 = arith.select %7, %5, %10 : vector<8x32xi1>, vector<8x32xf32>
    %c0_7 = arith.constant 0 : index
    %c0_8 = arith.constant 0 : index
    %12 = vector.load %arg4[%c0_7, %c0_8] : memref<32x32xf32, #tpu.memory_space<vmem>>, vector<32x32xf32>
    %c0_9 = arith.constant 0 : index
    %c0_10 = arith.constant 0 : index
    %13 = vector.load %arg5[%c0_9, %c0_10] : memref<1x32xf32, #tpu.memory_space<vmem>>, vector<1x32xf32>
    %cst_11 = arith.constant dense<0.000000e+00> : vector<8x32xf32>
    %14 = tpu.matmul %11, %12, %cst_11 {dimension_numbers = #tpu.dot_dimension_numbers<[1], [0], [0], [1], [0, 0, 1, 1], [], []>} : vector<8x32xf32>, vector<32x32xf32>, vector<8x32xf32> -> vector<8x32xf32>
    %15 = vector.broadcast %13 : vector<1x32xf32> to vector<8x32xf32>
    %16 = arith.addf %14, %15 : vector<8x32xf32>
    %cst_12 = arith.constant 0.000000e+00 : f32
    %17 = vector.broadcast %cst_12 : f32 to vector<8x32xf32>
    %18 = arith.cmpf ogt, %16, %17 : vector<8x32xf32>
    %19 = math.exp %16 : vector<8x32xf32>
    %cst_13 = arith.constant 1.000000e+00 : f32
    %20 = vector.broadcast %cst_13 : f32 to vector<8x32xf32>
    %21 = arith.subf %19, %20 : vector<8x32xf32>
    %22 = arith.select %18, %16, %21 : vector<8x32xi1>, vector<8x32xf32>
    %c0_14 = arith.constant 0 : index
    %c0_15 = arith.constant 0 : index
    %23 = vector.load %arg6[%c0_14, %c0_15] : memref<32x128xf32, #tpu.memory_space<vmem>>, vector<32x128xf32>
    %c0_16 = arith.constant 0 : index
    %c0_17 = arith.constant 0 : index
    %24 = vector.load %arg7[%c0_16, %c0_17] : memref<1x128xf32, #tpu.memory_space<vmem>>, vector<1x128xf32>
    %cst_18 = arith.constant dense<0.000000e+00> : vector<8x128xf32>
    %25 = tpu.matmul %22, %23, %cst_18 {dimension_numbers = #tpu.dot_dimension_numbers<[1], [0], [0], [1], [0, 0, 1, 1], [], []>} : vector<8x32xf32>, vector<32x128xf32>, vector<8x128xf32> -> vector<8x128xf32>
    %26 = vector.broadcast %24 : vector<1x128xf32> to vector<8x128xf32>
    %27 = arith.addf %25, %26 : vector<8x128xf32>
    %c0_19 = arith.constant 0 : index
    %c0_20 = arith.constant 0 : index
    %28 = vector.load %arg8[%c0_19, %c0_20] : memref<8x128xf32, #tpu.memory_space<vmem>>, vector<8x128xf32>
    tpu.vector_store %arg8[%c0_19, %c0_20], %27 {strides = array<i32>} : memref<8x128xf32, #tpu.memory_space<vmem>>, vector<8x128xf32>,
    return
  }
  func.func @transform_0(%arg0: i32) -> (i32, i32) {
    %c0_i32 = arith.constant 0 : i32
    %c0_i32_0 = arith.constant 0 : i32
    return %arg0, %c0_i32 : i32, i32
  }
  func.func @transform_1(%arg0: i32) -> (i32, i32) {
    %c0_i32 = arith.constant 0 : i32
    %c0_i32_0 = arith.constant 0 : i32
    %c0_i32_1 = arith.constant 0 : i32
    return %c0_i32, %c0_i32_0 : i32, i32
  }
  func.func @transform_2(%arg0: i32) -> (i32, i32) {
    %c0_i32 = arith.constant 0 : i32
    %c0_i32_0 = arith.constant 0 : i32
    %c0_i32_1 = arith.constant 0 : i32
    return %c0_i32, %c0_i32_0 : i32, i32
  }
  func.func @transform_3(%arg0: i32) -> (i32, i32) {
    %c0_i32 = arith.constant 0 : i32
    %c0_i32_0 = arith.constant 0 : i32
    %c0_i32_1 = arith.constant 0 : i32
    return %c0_i32, %c0_i32_0 : i32, i32
  }
  func.func @transform_4(%arg0: i32) -> (i32, i32) {
    %c0_i32 = arith.constant 0 : i32
    %c0_i32_0 = arith.constant 0 : i32
    %c0_i32_1 = arith.constant 0 : i32
    return %c0_i32, %c0_i32_0 : i32, i32
  }
  func.func @transform_5(%arg0: i32) -> (i32, i32) {
    %c0_i32 = arith.constant 0 : i32
    %c0_i32_0 = arith.constant 0 : i32
    %c0_i32_1 = arith.constant 0 : i32
    return %c0_i32, %c0_i32_0 : i32, i32
  }
  func.func @transform_6(%arg0: i32) -> (i32, i32) {
    %c0_i32 = arith.constant 0 : i32
    %c0_i32_0 = arith.constant 0 : i32
    %c0_i32_1 = arith.constant 0 : i32
    return %c0_i32, %c0_i32_0 : i32, i32
  }
  func.func @transform_7(%arg0: i32) -> (i32, i32) {
    %c0_i32 = arith.constant 0 : i32
    %c0_i32_0 = arith.constant 0 : i32
    return %arg0, %c0_i32 : i32, i32
  }
}

module attributes {stable_mosaic.version = 11 : i64} {
  func.func @_dense_decoder_kernel(%arg0: i32, %arg1: memref<8x32xf32, #tpu.memory_space<vmem>>, %arg2: memref<32x32xf32, #tpu.memory_space<vmem>>, %arg3: memref<1x32xf32, #tpu.memory_space<vmem>>, %arg4: memref<32x32xf32, #tpu.memory_space<vmem>>, %arg5: memref<1x32xf32, #tpu.memory_space<vmem>>, %arg6: memref<32x128xf32, #tpu.memory_space<vmem>>, %arg7: memref<1x128xf32, #tpu.memory_space<vmem>>, %arg8: memref<8x128xf32, #tpu.memory_space<vmem>>) attributes {dimension_semantics = [#tpu.dimension_semantics<parallel>], iteration_bounds = array<i64: 1>, scalar_prefetch = 0 : i64, scratch_operands = 0 : i64, tpu.core_type = #tpu.core_type<tc>, window_params = [{transform_indices = @transform_0, window_bounds = array<i64: 8, 32>}, {pipeline_mode = #tpu.pipeline_mode<synchronous>, transform_indices = @transform_1, window_bounds = array<i64: 32, 32>}, {pipeline_mode = #tpu.pipeline_mode<synchronous>, transform_indices = @transform_2, window_bounds = array<i64: 1, 32>}, {pipeline_mode = #tpu.pipeline_mode<synchronous>, transform_indices = @transform_3, window_bounds = array<i64: 32, 32>}, {pipeline_mode = #tpu.pipeline_mode<synchronous>, transform_indices = @transform_4, window_bounds = array<i64: 1, 32>}, {pipeline_mode = #tpu.pipeline_mode<synchronous>, transform_indices = @transform_5, window_bounds = array<i64: 32, 128>}, {pipeline_mode = #tpu.pipeline_mode<synchronous>, transform_indices = @transform_6, window_bounds = array<i64: 1, 128>}, {transform_indices = @transform_7, window_bounds = array<i64: 8, 128>}]} {
    %c0 = arith.constant 0 : index
    %c0_0 = arith.constant 0 : index
    %0 = vector.load %arg1[%c0, %c0_0] : memref<8x32xf32, #tpu.memory_space<vmem>>, vector<8x32xf32>
    %c0_1 = arith.constant 0 : index
    %c0_2 = arith.constant 0 : index
    %1 = vector.load %arg2[%c0_1, %c0_2] : memref<32x32xf32, #tpu.memory_space<vmem>>, vector<32x32xf32>
    %c0_3 = arith.constant 0 : index
    %c0_4 = arith.constant 0 : index
    %2 = vector.load %arg3[%c0_3, %c0_4] : memref<1x32xf32, #tpu.memory_space<vmem>>, vector<1x32xf32>
    %cst = arith.constant dense<0.000000e+00> : vector<8x32xf32>
    %3 = tpu.matmul %0, %1, %cst {dimension_numbers = #tpu.dot_dimension_numbers<[1], [0], [0], [1], [0, 0, 1, 1], [], []>} : vector<8x32xf32>, vector<32x32xf32>, vector<8x32xf32> -> vector<8x32xf32>
    %4 = vector.broadcast %2 : vector<1x32xf32> to vector<8x32xf32>
    %5 = arith.addf %3, %4 : vector<8x32xf32>
    %cst_5 = arith.constant 0.000000e+00 : f32
    %6 = vector.broadcast %cst_5 : f32 to vector<8x32xf32>
    %7 = arith.cmpf ogt, %5, %6 : vector<8x32xf32>
    %8 = math.exp %5 : vector<8x32xf32>
    %cst_6 = arith.constant 1.000000e+00 : f32
    %9 = vector.broadcast %cst_6 : f32 to vector<8x32xf32>
    %10 = arith.subf %8, %9 : vector<8x32xf32>
    %11 = arith.select %7, %5, %10 : vector<8x32xi1>, vector<8x32xf32>
    %c0_7 = arith.constant 0 : index
    %c0_8 = arith.constant 0 : index
    %12 = vector.load %arg4[%c0_7, %c0_8] : memref<32x32xf32, #tpu.memory_space<vmem>>, vector<32x32xf32>
    %c0_9 = arith.constant 0 : index
    %c0_10 = arith.constant 0 : index
    %13 = vector.load %arg5[%c0_9, %c0_10] : memref<1x32xf32, #tpu.memory_space<vmem>>, vector<1x32xf32>
    %cst_11 = arith.constant dense<0.000000e+00> : vector<8x32xf32>
    %14 = tpu.matmul %11, %12, %cst_11 {dimension_numbers = #tpu.dot_dimension_numbers<[1], [0], [0], [1], [0, 0, 1, 1], [], []>} : vector<8x32xf32>, vector<32x32xf32>, vector<8x32xf32> -> vector<8x32xf32>
    %15 = vector.broadcast %13 : vector<1x32xf32> to vector<8x32xf32>
    %16 = arith.addf %14, %15 : vector<8x32xf32>
    %cst_12 = arith.constant 0.000000e+00 : f32
    %17 = vector.broadcast %cst_12 : f32 to vector<8x32xf32>
    %18 = arith.cmpf ogt, %16, %17 : vector<8x32xf32>
    %19 = math.exp %16 : vector<8x32xf32>
    %cst_13 = arith.constant 1.000000e+00 : f32
    %20 = vector.broadcast %cst_13 : f32 to vector<8x32xf32>
    %21 = arith.subf %19, %20 : vector<8x32xf32>
    %22 = arith.select %18, %16, %21 : vector<8x32xi1>, vector<8x32xf32>
    %c0_14 = arith.constant 0 : index
    %c0_15 = arith.constant 0 : index
    %23 = vector.load %arg6[%c0_14, %c0_15] : memref<32x128xf32, #tpu.memory_space<vmem>>, vector<32x128xf32>
    %c0_16 = arith.constant 0 : index
    %c0_17 = arith.constant 0 : index
    %24 = vector.load %arg7[%c0_16, %c0_17] : memref<1x128xf32, #tpu.memory_space<vmem>>, vector<1x128xf32>
    %cst_18 = arith.constant dense<0.000000e+00> : vector<8x128xf32>
    %25 = tpu.matmul %22, %23, %cst_18 {dimension_numbers = #tpu.dot_dimension_numbers<[1], [0], [0], [1], [0, 0, 1, 1], [], []>} : vector<8x32xf32>, vector<32x128xf32>, vector<8x128xf32> -> vector<8x128xf32>
    %26 = vector.broadcast %24 : vector<1x128xf32> to vector<8x128xf32>
    %27 = arith.addf %25, %26 : vector<8x128xf32>
    %c0_19 = arith.constant 0 : index
    %c0_20 = arith.constant 0 : index
    %28 = vector.load %arg8[%c0_19, %c0_20] : memref<8x128xf32, #tpu.memory_space<vmem>>, vector<8x128xf32>
    tpu.vector_store %arg8[%c0_19, %c0_20], %27 {strides = array<i32>} : memref<8x128xf32, #tpu.memory_space<vmem>>, vector<8x128xf32>,
    return
  }
  func.func @transform_0(%arg0: i32) -> (i32, i32) {
    %c0_i32 = arith.constant 0 : i32
    %c0_i32_0 = arith.constant 0 : i32
    return %arg0, %c0_i32 : i32, i32
  }
  func.func @transform_1(%arg0: i32) -> (i32, i32) {
    %c0_i32 = arith.constant 0 : i32
    %c0_i32_0 = arith.constant 0 : i32
    %c0_i32_1 = arith.constant 0 : i32
    return %c0_i32, %c0_i32_0 : i32, i32
  }
  func.func @transform_2(%arg0: i32) -> (i32, i32) {
    %c0_i32 = arith.constant 0 : i32
    %c0_i32_0 = arith.constant 0 : i32
    %c0_i32_1 = arith.constant 0 : i32
    return %c0_i32, %c0_i32_0 : i32, i32
  }
  func.func @transform_3(%arg0: i32) -> (i32, i32) {
    %c0_i32 = arith.constant 0 : i32
    %c0_i32_0 = arith.constant 0 : i32
    %c0_i32_1 = arith.constant 0 : i32
    return %c0_i32, %c0_i32_0 : i32, i32
  }
  func.func @transform_4(%arg0: i32) -> (i32, i32) {
    %c0_i32 = arith.constant 0 : i32
    %c0_i32_0 = arith.constant 0 : i32
    %c0_i32_1 = arith.constant 0 : i32
    return %c0_i32, %c0_i32_0 : i32, i32
  }
  func.func @transform_5(%arg0: i32) -> (i32, i32) {
    %c0_i32 = arith.constant 0 : i32
    %c0_i32_0 = arith.constant 0 : i32
    %c0_i32_1 = arith.constant 0 : i32
    return %c0_i32, %c0_i32_0 : i32, i32
  }
  func.func @transform_6(%arg0: i32) -> (i32, i32) {
    %c0_i32 = arith.constant 0 : i32
    %c0_i32_0 = arith.constant 0 : i32
    %c0_i32_1 = arith.constant 0 : i32
    return %c0_i32, %c0_i32_0 : i32, i32
  }
  func.func @transform_7(%arg0: i32) -> (i32, i32) {
    %c0_i32 = arith.constant 0 : i32
    %c0_i32_0 = arith.constant 0 : i32
    return %arg0, %c0_i32 : i32, i32
  }
}

</mosaic_0001>

<bundles_post_ra>
// kernel: tpu_custom_call.1
= control target key start
LH: loop header
LB: loop body
LE: loop exit
PB: predicated region body
PF: predicated region fallthrough
CT: control target
= control target key end

     0   :  { %12 = vsyncpa [#allocation3], 0  ;;  %s838_s0 = inlined_call_operand.hbm [shape: f32[8,32], index: 0, kind: input, shape index: {}]   ;;  %s839_s1 = inlined_call_operand.hbm [shape: f32[32,32], index: 1, kind: input, shape index: {}]   ;;  %s840_s2 = inlined_call_operand.hbm [shape: f32[1,32], index: 2, kind: input, shape index: {}]   ;;  %s841_s3 = inlined_call_operand.hbm [shape: f32[32,32], index: 3, kind: input, shape index: {}]   ;;  %s842_s4 = inlined_call_operand.hbm [shape: f32[1,32], index: 4, kind: input, shape index: {}]   ;;  %s843_s5 = inlined_call_operand.hbm [shape: f32[32,128], index: 5, kind: input, shape index: {}]   ;;  %s844_s6 = inlined_call_operand.hbm [shape: f32[1,128], index: 6, kind: input, shape index: {}]   ;;  %s845_s7 = inlined_call_operand.hbm [shape: f32[8,128], index: 7, kind: output, shape index: {}]  }
   0x1   :  { %13 = vsyncpa [#allocation6], 0 }
   0x2   :  { %14 = vsyncpa [#allocation9], 0 }
   0x3   :  { %15 = vsyncpa [#allocation12], 0 }
   0x4   :  { %16 = vsyncpa [#allocation4], 0  ;;  %s674_s24 = smov [#allocation5]   ;;  %s488_s28 = scalar_lea.hbm %s839_s1, 512 }
   0x5   :  { %s32_s25 = sshll.u32 %s674_s24, 4  ;;  %p489_p0 = scmp.ne.s32.totalorder %s839_s1, %s488_s28  ;;  %s33_s25 = int_to_ptr.vmem [resolvable:$true] %s32_s25 }
   0x6   :  { %p492_p1 = scmp.lt.u32.totalorder %s488_s28, %s839_s1 }
   0x8   :  { %p494_p2 = pnand %p492_p1, %p489_p0 }
   0xa   :  { %497 = shalt.err (!%p494_p2)
}
   0xb   :  { %s498_s10 = scalar_lea.vmem %s33_s25, 512  ;;  %p503_p4 = scmp.lt.s32.totalorder %s33_s25, %s33_s25 }
   0xc   :  { %p499_p3 = scmp.ne.s32.totalorder %s33_s25, %s498_s10  ;;  %p504_p5 = scmp.lt.s32.totalorder %s498_s10, %s498_s10 }
   0xe   :  { %p505_p6 = por %p504_p5, %p503_p4 }
  0x10   :  { %p506_p7 = pnand %p505_p6, %p499_p3 }
  0x12   :  { %509 = shalt.err (!%p506_p7)
}
  0x13   :  { %s675_s11 = smov 128   ;;  %s676_s12 = smov 8  }
  0x14   :  { %38 = dma.hbm_to_vmem [thread:$0]  %s839_s1, 512, %s33_s25, [#allocation6], %s675_s11, %s675_s11, %s676_s12  }
  0x15   :  { %s677_s15 = smov [#allocation8]   ;;  %s678_s17 = smov [#allocation11]  }
  0x16   :  { %s54_s16 = sshll.u32 %s677_s15, 4  ;;  %s76_s18 = sshll.u32 %s678_s17, 4  ;;  %s55_s16 = int_to_ptr.vmem [resolvable:$true] %s54_s16  ;;  %s77_s18 = int_to_ptr.vmem [resolvable:$true] %s76_s18 }
  0x17   :  { %s510_s21 = scalar_lea.hbm %s841_s3, 512 }
  0x18   :  { %p511_p8 = scmp.ne.s32.totalorder %s841_s3, %s510_s21  ;;  %p514_p9 = scmp.lt.u32.totalorder %s510_s21, %s841_s3 }
  0x1a   :  { %p516_p10 = pnand %p514_p9, %p511_p8 }
  0x1c   :  { %519 = shalt.err (!%p516_p10)
}
  0x1d   :  { %s520_s1 = scalar_lea.vmem %s55_s16, 512  ;;  %p525_p12 = scmp.lt.s32.totalorder %s55_s16, %s55_s16 }
  0x1e   :  { %p521_p11 = scmp.ne.s32.totalorder %s55_s16, %s520_s1  ;;  %p526_p13 = scmp.lt.s32.totalorder %s520_s1, %s520_s1 }
  0x20   :  { %p527_p0 = por %p526_p13, %p525_p12 }
  0x22   :  { %p528_p1 = pnand %p527_p0, %p521_p11 }
  0x24   :  { %531 = shalt.err (!%p528_p1)
}
  0x25   :  { %60 = dma.hbm_to_vmem [thread:$0]  %s841_s3, 512, %s55_s16, [#allocation9], %s675_s11, %s675_s11, %s676_s12  }
  0x26   :  { %s532_s30 = scalar_lea.hbm %s843_s5, 512 }
  0x27   :  { %p533_p2 = scmp.ne.s32.totalorder %s843_s5, %s532_s30  ;;  %p536_p3 = scmp.lt.u32.totalorder %s532_s30, %s843_s5 }
  0x29   :  { %p538_p4 = pnand %p536_p3, %p533_p2 }
  0x2b   :  { %541 = shalt.err (!%p538_p4)
}
  0x2c   :  { %s542_s14 = scalar_lea.vmem %s77_s18, 512  ;;  %p547_p6 = scmp.lt.s32.totalorder %s77_s18, %s77_s18 }
  0x2d   :  { %p543_p5 = scmp.ne.s32.totalorder %s77_s18, %s542_s14  ;;  %p548_p7 = scmp.lt.s32.totalorder %s542_s14, %s542_s14 }
  0x2f   :  { %p549_p8 = por %p548_p7, %p547_p6 }
  0x31   :  { %p550_p9 = pnand %p549_p8, %p543_p5 }
  0x33   :  { %553 = shalt.err (!%p550_p9)
}
  0x34   :  { %82 = dma.hbm_to_vmem [thread:$0]  %s843_s5, 512, %s77_s18, [#allocation12], %s675_s11, %s675_s11, %s676_s12  }
  0x35   :  { %s679_s16 = smov [#allocation2]   ;;  %s680_s19 = smov [#allocation7]  }
  0x36   :  { %s23_s17 = sshll.u32 %s679_s16, 4  ;;  %s45_s20 = sshll.u32 %s680_s19, 4  ;;  %s24_s17 = int_to_ptr.vmem [resolvable:$true] %s23_s17  ;;  %s46_s20 = int_to_ptr.vmem [resolvable:$true] %s45_s20 }
  0x37   :  { %s554_s23 = scalar_lea.hbm %s838_s0, 128 }
  0x38   :  { %p555_p10 = scmp.ne.s32.totalorder %s838_s0, %s554_s23  ;;  %p558_p11 = scmp.lt.u32.totalorder %s554_s23, %s838_s0 }
  0x3a   :  { %p560_p12 = pnand %p558_p11, %p555_p10 }
  0x3c   :  { %563 = shalt.err (!%p560_p12)
}
  0x3d   :  { %s564_s5 = scalar_lea.vmem %s24_s17, 128  ;;  %p569_p0 = scmp.lt.s32.totalorder %s24_s17, %s24_s17 }
  0x3e   :  { %p565_p13 = scmp.ne.s32.totalorder %s24_s17, %s564_s5  ;;  %p570_p1 = scmp.lt.s32.totalorder %s564_s5, %s564_s5 }
  0x40   :  { %p571_p2 = por %p570_p1, %p569_p0 }
  0x42   :  { %p572_p3 = pnand %p571_p2, %p565_p13 }
  0x44   :  { %575 = shalt.err (!%p572_p3)
}
  0x45   :  { %26 = dma.hbm_to_vmem [thread:$0]  %s838_s0, 128, %s24_s17, [#allocation3]  }
  0x46   :  { %s576_s28 = scalar_lea.hbm %s840_s2, 16 }
  0x47   :  { %p577_p4 = scmp.ne.s32.totalorder %s840_s2, %s576_s28  ;;  %p580_p5 = scmp.lt.u32.totalorder %s576_s28, %s840_s2 }
  0x49   :  { %p582_p6 = pnand %p580_p5, %p577_p4 }
  0x4b   :  { %585 = shalt.err (!%p582_p6)
}
  0x4c   :  { %s586_s10 = scalar_lea.vmem %s46_s20, 16  ;;  %s590_s13 = scalar_lea.vmem %s46_s20, 32 }
  0x4d   :  { %p587_p7 = scmp.ne.s32.totalorder %s46_s20, %s586_s10  ;;  %p591_p8 = scmp.lt.s32.totalorder %s46_s20, %s46_s20 }
  0x4e   :  { %p592_p9 = scmp.lt.s32.totalorder %s590_s13, %s586_s10 }
  0x50   :  { %p593_p10 = por %p592_p9, %p591_p8 }
  0x52   :  { %p594_p11 = pnand %p593_p10, %p587_p7 }
  0x54   :  { %597 = shalt.err (!%p594_p11)
}
  0x55   :  { %48 = dma.hbm_to_vmem [thread:$0]  %s840_s2, 16, %s46_s20, [#allocation6]  }
  0x56   :  { %s681_s3 = smov [#allocation10]   ;;  %s682_s16 = smov [#allocation13]  }
  0x57   :  { %s67_s15 = sshll.u32 %s681_s3, 4  ;;  %s89_s17 = sshll.u32 %s682_s16, 4  ;;  %s68_s15 = int_to_ptr.vmem [resolvable:$true] %s67_s15  ;;  %s90_s17 = int_to_ptr.vmem [resolvable:$true] %s89_s17 }
  0x58   :  { %s598_s22 = scalar_lea.hbm %s842_s4, 16 }
  0x59   :  { %p599_p12 = scmp.ne.s32.totalorder %s842_s4, %s598_s22  ;;  %p602_p13 = scmp.lt.u32.totalorder %s598_s22, %s842_s4 }
  0x5b   :  { %p604_p0 = pnand %p602_p13, %p599_p12 }
  0x5d   :  { %607 = shalt.err (!%p604_p0)
}
  0x5e   :  { %s608_s2 = scalar_lea.vmem %s68_s15, 16  ;;  %s612_s20 = scalar_lea.vmem %s68_s15, 32 }
  0x5f   :  { %p609_p1 = scmp.ne.s32.totalorder %s68_s15, %s608_s2  ;;  %p613_p2 = scmp.lt.s32.totalorder %s68_s15, %s68_s15 }
  0x60   :  { %p614_p3 = scmp.lt.s32.totalorder %s612_s20, %s608_s2 }
  0x62   :  { %p615_p4 = por %p614_p3, %p613_p2 }
  0x64   :  { %p616_p5 = pnand %p615_p4, %p609_p1 }
  0x66   :  { %619 = shalt.err (!%p616_p5)
}
  0x67   :  { %70 = dma.hbm_to_vmem [thread:$0]  %s842_s4, 16, %s68_s15, [#allocation9]  }
  0x68   :  { %s620_s18 = scalar_lea.hbm %s844_s6, 16 }
  0x69   :  { %p621_p6 = scmp.ne.s32.totalorder %s844_s6, %s620_s18  ;;  %p624_p7 = scmp.lt.u32.totalorder %s620_s18, %s844_s6 }
  0x6b   :  { %p626_p8 = pnand %p624_p7, %p621_p6 }
  0x6d   :  { %629 = shalt.err (!%p626_p8)
}
  0x6e   :  { %s630_s8 = scalar_lea.vmem %s90_s17, 16  ;;  %s634_s9 = scalar_lea.vmem %s90_s17, 32 }
  0x6f   :  { %p631_p9 = scmp.ne.s32.totalorder %s90_s17, %s630_s8  ;;  %p635_p10 = scmp.lt.s32.totalorder %s90_s17, %s90_s17 }
  0x70   :  { %p636_p11 = scmp.lt.s32.totalorder %s634_s9, %s630_s8 }
  0x72   :  { %p637_p12 = por %p636_p11, %p635_p10 }
  0x74   :  { %p638_p13 = pnand %p637_p12, %p631_p9 }
  0x76   :  { %641 = shalt.err (!%p638_p13)
}
  0x77   :  { %92 = dma.hbm_to_vmem [thread:$0]  %s844_s6, 16, %s90_s17, [#allocation12]  }
  0x78   :  { %664 = dma.done.wait [#allocation3], 128  }
  0x79   :  { %665 = vsyncadd [#allocation3], 4294967168 }
  0x7a   :  { %666 = dma.done.wait [#allocation6], 528  }
  0x7b   :  { %667 = vsyncadd [#allocation6], 4294966768 }
  0x7c   :  { %668 = dma.done.wait [#allocation9], 528  }
  0x7d   :  { %669 = vsyncadd [#allocation9], 4294966768 }
  0x7e   :  { %670 = dma.done.wait [#allocation12], 528  }
  0x7f   :  { %671 = vsyncadd [#allocation12], 4294966768  ;;  %v683_v0 = vmov 0.0|0.0   ;;  %vm684_vm0 = vmmov 0   ;;  %v685_v1 = vmov 0.0   ;;  %v115_v2 = vld [vmem:[#allocation5] sm:$0xff] }
  0x80   :  { %453 = vmatprep.subr.bf16.mxu0 %v683_v0  ;;  %428 = vmatprep.mubr.msk.f32.mxu0 %vm684_vm0, %v685_v1  ;;  %v116_v3 = vld [vmem:[#allocation5 + $0x8] sm:$0xff]  ;;  %v117_v4 = vld [vmem:[#allocation5 + $0x10] sm:$0xff]  ;;  %v118_v6 = vld [vmem:[#allocation5 + $0x18] sm:$0xff]  ;;  %vm126_vm1 = vcmask 261120   ;;  %s686_s6 = smov [#allocation14]  }
  0x81   :  { %459 = vmatprep.subr.bf16.mxu1 %v683_v0  ;;  %439 = vmatprep.mubr.msk.f32.mxu1 %vm684_vm0, %v685_v1  ;;  %v454_v5 = vpack.c.bf16 %v116_v3, %v115_v2  ;;  %v457_v7 = vpack.c.bf16 %v118_v6, %v117_v4  ;;  %v114_v8 = vld [vmem:[#allocation2] sm:$0xff]  ;;  %v205_v9 = vld [vmem:[#allocation8] sm:$0xff]  ;;  %v206_v10 = vld [vmem:[#allocation8 + $0x8] sm:$0xff]  ;;  %s385_s13 = sshll.u32 %s686_s6, 4  ;;  %s386_s13 = int_to_ptr.vmem [resolvable:$true] %s385_s13 }
  0x82   :  { %v207_v11 = vld [vmem:[#allocation8 + $0x10] sm:$0xff]  ;;  %v460_v12 = vpack.c.bf16 %v206_v10, %v205_v9  ;;  %v208_v13 = vld [vmem:[#allocation8 + $0x18] sm:$0xff]  ;;  %v294_v23 = vld [vmem:[#allocation11] sm:$0xff]  ;;  %s642_s0 = scalar_lea.vmem %s386_s13, 128  ;;  %p647_p1 = scmp.lt.s32.totalorder %s386_s13, %s386_s13 }
  0x83   :  { %455 = vmatpush3.bf16.msra.mxu0 %v454_v5  ;;  %v463_v14 = vpack.c.bf16 %v208_v13, %v207_v11  ;;  %v397_v15 = vld [vmem:[#allocation7] ss:$0 sm:$0xff]  ;;  %v295_v24 = vld [vmem:[#allocation11 + $0x8] sm:$0xff]  ;;  %v296_v26 = vld [vmem:[#allocation11 + $0x10] sm:$0xff]  ;;  %p643_p0 = scmp.ne.s32.totalorder %s386_s13, %s642_s0  ;;  %p648_p2 = scmp.lt.s32.totalorder %s642_s0, %s642_s0 }
  0x84   :  { %456 = vmatprep.subr.bf16.mxu0 %v683_v0  ;;  %461 = vmatpush3.bf16.msra.mxu1 %v460_v12  ;;  %v466_v25 = vpack.c.bf16 %v295_v24, %v294_v23  ;;  %v297_v27 = vld [vmem:[#allocation11 + $0x18] sm:$0xff]  ;;  %v403_v37 = vld [vmem:[#allocation13] ss:$0 sm:$0xff] }
  0x85   :  { %462 = vmatprep.subr.bf16.mxu1 %v683_v0  ;;  %v469_v28 = vpack.c.bf16 %v297_v27, %v296_v26  ;;  %v400_v29 = vld [vmem:[#allocation10] ss:$0 sm:$0xff]  ;;  %p649_p3 = por %p648_p2, %p647_p1 }
  0x87   :  { %458 = vmatpush3.bf16.msra.mxu0 %v457_v7  ;;  %p650_p4 = pnand %p649_p3, %p643_p0 }
  0x88   :  { %465 = vmatprep.subr.bf16.mxu0 %v683_v0  ;;  %464 = vmatpush3.bf16.msra.mxu1 %v463_v14 }
  0x8a   :  { %429 = vmatmul.mubr.msk.f32.vlgmr.msra.gmra.mrb[0].mxu0 %vm126_vm1, %v114_v8 }
  0x8b   :  { %450 = vmatprep.mubr.msk.f32.mxu0 %vm684_vm0, %v685_v1  ;;  %467 = vmatpush3.bf16.msra.mxu0 %v466_v25 }
  0x8c   :  { %468 = vmatprep.subr.bf16.mxu0 %v683_v0 }
  0x8f   :  { %470 = vmatpush3.bf16.msra.mxu0 %v469_v28 }
 0x15d   :  { %v196_v16 = vpop.f32.mrb[0].mxu0 }
 0x15e   :  { %v197_v17 = vadd.f32 %v397_v15, %v196_v16  ;;  %v430_v18 = vpop.f32.mrb[1].mxu0 }
 0x160   :  { %v201_v19 = vmul.f32 1.442695, %v197_v17  ;;  %vm200_vm2 = vcmp.gt.f32.partialorder %v197_v17, 0.0 }
 0x162   :  { %484 = vpow2.f32 %v201_v19 }
 0x16c   :  { %v485_v20 = vpop.eup %484 }
 0x16d   :  { %v399_v21 = vadd.f32 -1.0, %v485_v20 }
 0x16f   :  { %v204_v22 = vsel %vm200_vm2, %v197_v17, %v399_v21 }
 0x170   :  { %440 = vmatmul.mubr.msk.f32.vlgmr.msra.gmra.mrb[0].mxu1 %vm126_vm1, %v204_v22 }
 0x243   :  { %v285_v30 = vpop.f32.mrb[0].mxu1 }
 0x244   :  { %v286_v31 = vadd.f32 %v400_v29, %v285_v30  ;;  %v441_v32 = vpop.f32.mrb[1].mxu1 }
 0x246   :  { %v290_v33 = vmul.f32 1.442695, %v286_v31  ;;  %vm289_vm3 = vcmp.gt.f32.partialorder %v286_v31, 0.0 }
 0x248   :  { %486 = vpow2.f32 %v290_v33 }
 0x252   :  { %v487_v34 = vpop.eup %486 }
 0x253   :  { %v402_v35 = vadd.f32 -1.0, %v487_v34 }
 0x255   :  { %v293_v36 = vsel %vm289_vm3, %v286_v31, %v402_v35 }
 0x256   :  { %451 = vmatmul.mubr.msk.f32.vlgmr.msra.gmra.mrb[2].mxu0 %vm126_vm1, %v293_v36 }
 0x329   :  { %v374_v38 = vpop.f32.mrb[2].mxu0 }
 0x32a   :  { %v375_v39 = vadd.f32 %v403_v37, %v374_v38  ;;  %v452_v40 = vpop.f32.mrb[3].mxu0 }
 0x32c   :  { %378 = vst [vmem:[#allocation14] sm:$0xff] %v375_v39 }
 0x32d   :  { %653 = shalt.err (!%p650_p4)
}
 0x32e   :  { %s654_s15 = scalar_lea.hbm %s845_s7, 128 }
 0x32f   :  { %p655_p5 = scmp.ne.s32.totalorder %s845_s7, %s654_s15  ;;  %p658_p6 = scmp.lt.u32.totalorder %s654_s15, %s845_s7 }
 0x331   :  { %p660_p7 = pnand %p658_p6, %p655_p5 }
 0x333   :  { %663 = shalt.err (!%p660_p7)
}
 0x334   :  { %388 = dma.vmem_to_hbm [thread:$0]  %s386_s13, 128, %s845_s7, [#allocation4]  }
 0x335   :  { %672 = dma.done.wait [#allocation4], 128  }
 0x336   :  { %673 = vsyncadd [#allocation4], 4294967168 }
 0x337   :  { %392 = vsyncpa [#allocation3], 1 }
 0x338   :  { %393 = vsyncpa [#allocation6], 1 }
 0x339   :  { %394 = vsyncpa [#allocation9], 1 }
 0x33a   :  { %395 = vsyncpa [#allocation12], 1 }
 0x33b   :  { %396 = vsyncpa [#allocation4], 1 }

// kernel: tpu_custom_call.1
= control target key start
LH: loop header
LB: loop body
LE: loop exit
PB: predicated region body
PF: predicated region fallthrough
CT: control target
= control target key end

     0   :  { %12 = vsyncpa [#allocation3], 0  ;;  %s838_s0 = inlined_call_operand.hbm [shape: f32[8,32], index: 0, kind: input, shape index: {}]   ;;  %s839_s1 = inlined_call_operand.hbm [shape: f32[32,32], index: 1, kind: input, shape index: {}]   ;;  %s840_s2 = inlined_call_operand.hbm [shape: f32[1,32], index: 2, kind: input, shape index: {}]   ;;  %s841_s3 = inlined_call_operand.hbm [shape: f32[32,32], index: 3, kind: input, shape index: {}]   ;;  %s842_s4 = inlined_call_operand.hbm [shape: f32[1,32], index: 4, kind: input, shape index: {}]   ;;  %s843_s5 = inlined_call_operand.hbm [shape: f32[32,128], index: 5, kind: input, shape index: {}]   ;;  %s844_s6 = inlined_call_operand.hbm [shape: f32[1,128], index: 6, kind: input, shape index: {}]   ;;  %s845_s7 = inlined_call_operand.hbm [shape: f32[8,128], index: 7, kind: output, shape index: {}]  }
   0x1   :  { %13 = vsyncpa [#allocation6], 0 }
   0x2   :  { %14 = vsyncpa [#allocation9], 0 }
   0x3   :  { %15 = vsyncpa [#allocation12], 0 }
   0x4   :  { %16 = vsyncpa [#allocation4], 0  ;;  %s674_s24 = smov [#allocation5]   ;;  %s488_s28 = scalar_lea.hbm %s839_s1, 512 }
   0x5   :  { %s32_s25 = sshll.u32 %s674_s24, 4  ;;  %p489_p0 = scmp.ne.s32.totalorder %s839_s1, %s488_s28  ;;  %s33_s25 = int_to_ptr.vmem [resolvable:$true] %s32_s25 }
   0x6   :  { %p492_p1 = scmp.lt.u32.totalorder %s488_s28, %s839_s1 }
   0x8   :  { %p494_p2 = pnand %p492_p1, %p489_p0 }
   0xa   :  { %497 = shalt.err (!%p494_p2)
}
   0xb   :  { %s498_s10 = scalar_lea.vmem %s33_s25, 512  ;;  %p503_p4 = scmp.lt.s32.totalorder %s33_s25, %s33_s25 }
   0xc   :  { %p499_p3 = scmp.ne.s32.totalorder %s33_s25, %s498_s10  ;;  %p504_p5 = scmp.lt.s32.totalorder %s498_s10, %s498_s10 }
   0xe   :  { %p505_p6 = por %p504_p5, %p503_p4 }
  0x10   :  { %p506_p7 = pnand %p505_p6, %p499_p3 }
  0x12   :  { %509 = shalt.err (!%p506_p7)
}
  0x13   :  { %s675_s11 = smov 128   ;;  %s676_s12 = smov 8  }
  0x14   :  { %38 = dma.hbm_to_vmem [thread:$0]  %s839_s1, 512, %s33_s25, [#allocation6], %s675_s11, %s675_s11, %s676_s12  }
  0x15   :  { %s677_s15 = smov [#allocation8]   ;;  %s678_s17 = smov [#allocation11]  }
  0x16   :  { %s54_s16 = sshll.u32 %s677_s15, 4  ;;  %s76_s18 = sshll.u32 %s678_s17, 4  ;;  %s55_s16 = int_to_ptr.vmem [resolvable:$true] %s54_s16  ;;  %s77_s18 = int_to_ptr.vmem [resolvable:$true] %s76_s18 }
  0x17   :  { %s510_s21 = scalar_lea.hbm %s841_s3, 512 }
  0x18   :  { %p511_p8 = scmp.ne.s32.totalorder %s841_s3, %s510_s21  ;;  %p514_p9 = scmp.lt.u32.totalorder %s510_s21, %s841_s3 }
  0x1a   :  { %p516_p10 = pnand %p514_p9, %p511_p8 }
  0x1c   :  { %519 = shalt.err (!%p516_p10)
}
  0x1d   :  { %s520_s1 = scalar_lea.vmem %s55_s16, 512  ;;  %p525_p12 = scmp.lt.s32.totalorder %s55_s16, %s55_s16 }
  0x1e   :  { %p521_p11 = scmp.ne.s32.totalorder %s55_s16, %s520_s1  ;;  %p526_p13 = scmp.lt.s32.totalorder %s520_s1, %s520_s1 }
  0x20   :  { %p527_p0 = por %p526_p13, %p525_p12 }
  0x22   :  { %p528_p1 = pnand %p527_p0, %p521_p11 }
  0x24   :  { %531 = shalt.err (!%p528_p1)
}
  0x25   :  { %60 = dma.hbm_to_vmem [thread:$0]  %s841_s3, 512, %s55_s16, [#allocation9], %s675_s11, %s675_s11, %s676_s12  }
  0x26   :  { %s532_s30 = scalar_lea.hbm %s843_s5, 512 }
  0x27   :  { %p533_p2 = scmp.ne.s32.totalorder %s843_s5, %s532_s30  ;;  %p536_p3 = scmp.lt.u32.totalorder %s532_s30, %s843_s5 }
  0x29   :  { %p538_p4 = pnand %p536_p3, %p533_p2 }
  0x2b   :  { %541 = shalt.err (!%p538_p4)
}
  0x2c   :  { %s542_s14 = scalar_lea.vmem %s77_s18, 512  ;;  %p547_p6 = scmp.lt.s32.totalorder %s77_s18, %s77_s18 }
  0x2d   :  { %p543_p5 = scmp.ne.s32.totalorder %s77_s18, %s542_s14  ;;  %p548_p7 = scmp.lt.s32.totalorder %s542_s14, %s542_s14 }
  0x2f   :  { %p549_p8 = por %p548_p7, %p547_p6 }
  0x31   :  { %p550_p9 = pnand %p549_p8, %p543_p5 }
  0x33   :  { %553 = shalt.err (!%p550_p9)
}
  0x34   :  { %82 = dma.hbm_to_vmem [thread:$0]  %s843_s5, 512, %s77_s18, [#allocation12], %s675_s11, %s675_s11, %s676_s12  }
  0x35   :  { %s679_s16 = smov [#allocation2]   ;;  %s680_s19 = smov [#allocation7]  }
  0x36   :  { %s23_s17 = sshll.u32 %s679_s16, 4  ;;  %s45_s20 = sshll.u32 %s680_s19, 4  ;;  %s24_s17 = int_to_ptr.vmem [resolvable:$true] %s23_s17  ;;  %s46_s20 = int_to_ptr.vmem [resolvable:$true] %s45_s20 }
  0x37   :  { %s554_s23 = scalar_lea.hbm %s838_s0, 128 }
  0x38   :  { %p555_p10 = scmp.ne.s32.totalorder %s838_s0, %s554_s23  ;;  %p558_p11 = scmp.lt.u32.totalorder %s554_s23, %s838_s0 }
  0x3a   :  { %p560_p12 = pnand %p558_p11, %p555_p10 }
  0x3c   :  { %563 = shalt.err (!%p560_p12)
}
  0x3d   :  { %s564_s5 = scalar_lea.vmem %s24_s17, 128  ;;  %p569_p0 = scmp.lt.s32.totalorder %s24_s17, %s24_s17 }
  0x3e   :  { %p565_p13 = scmp.ne.s32.totalorder %s24_s17, %s564_s5  ;;  %p570_p1 = scmp.lt.s32.totalorder %s564_s5, %s564_s5 }
  0x40   :  { %p571_p2 = por %p570_p1, %p569_p0 }
  0x42   :  { %p572_p3 = pnand %p571_p2, %p565_p13 }
  0x44   :  { %575 = shalt.err (!%p572_p3)
}
  0x45   :  { %26 = dma.hbm_to_vmem [thread:$0]  %s838_s0, 128, %s24_s17, [#allocation3]  }
  0x46   :  { %s576_s28 = scalar_lea.hbm %s840_s2, 16 }
  0x47   :  { %p577_p4 = scmp.ne.s32.totalorder %s840_s2, %s576_s28  ;;  %p580_p5 = scmp.lt.u32.totalorder %s576_s28, %s840_s2 }
  0x49   :  { %p582_p6 = pnand %p580_p5, %p577_p4 }
  0x4b   :  { %585 = shalt.err (!%p582_p6)
}
  0x4c   :  { %s586_s10 = scalar_lea.vmem %s46_s20, 16  ;;  %s590_s13 = scalar_lea.vmem %s46_s20, 32 }
  0x4d   :  { %p587_p7 = scmp.ne.s32.totalorder %s46_s20, %s586_s10  ;;  %p591_p8 = scmp.lt.s32.totalorder %s46_s20, %s46_s20 }
  0x4e   :  { %p592_p9 = scmp.lt.s32.totalorder %s590_s13, %s586_s10 }
  0x50   :  { %p593_p10 = por %p592_p9, %p591_p8 }
  0x52   :  { %p594_p11 = pnand %p593_p10, %p587_p7 }
  0x54   :  { %597 = shalt.err (!%p594_p11)
}
  0x55   :  { %48 = dma.hbm_to_vmem [thread:$0]  %s840_s2, 16, %s46_s20, [#allocation6]  }
  0x56   :  { %s681_s3 = smov [#allocation10]   ;;  %s682_s16 = smov [#allocation13]  }
  0x57   :  { %s67_s15 = sshll.u32 %s681_s3, 4  ;;  %s89_s17 = sshll.u32 %s682_s16, 4  ;;  %s68_s15 = int_to_ptr.vmem [resolvable:$true] %s67_s15  ;;  %s90_s17 = int_to_ptr.vmem [resolvable:$true] %s89_s17 }
  0x58   :  { %s598_s22 = scalar_lea.hbm %s842_s4, 16 }
  0x59   :  { %p599_p12 = scmp.ne.s32.totalorder %s842_s4, %s598_s22  ;;  %p602_p13 = scmp.lt.u32.totalorder %s598_s22, %s842_s4 }
  0x5b   :  { %p604_p0 = pnand %p602_p13, %p599_p12 }
  0x5d   :  { %607 = shalt.err (!%p604_p0)
}
  0x5e   :  { %s608_s2 = scalar_lea.vmem %s68_s15, 16  ;;  %s612_s20 = scalar_lea.vmem %s68_s15, 32 }
  0x5f   :  { %p609_p1 = scmp.ne.s32.totalorder %s68_s15, %s608_s2  ;;  %p613_p2 = scmp.lt.s32.totalorder %s68_s15, %s68_s15 }
  0x60   :  { %p614_p3 = scmp.lt.s32.totalorder %s612_s20, %s608_s2 }
  0x62   :  { %p615_p4 = por %p614_p3, %p613_p2 }
  0x64   :  { %p616_p5 = pnand %p615_p4, %p609_p1 }
  0x66   :  { %619 = shalt.err (!%p616_p5)
}
  0x67   :  { %70 = dma.hbm_to_vmem [thread:$0]  %s842_s4, 16, %s68_s15, [#allocation9]  }
  0x68   :  { %s620_s18 = scalar_lea.hbm %s844_s6, 16 }
  0x69   :  { %p621_p6 = scmp.ne.s32.totalorder %s844_s6, %s620_s18  ;;  %p624_p7 = scmp.lt.u32.totalorder %s620_s18, %s844_s6 }
  0x6b   :  { %p626_p8 = pnand %p624_p7, %p621_p6 }
  0x6d   :  { %629 = shalt.err (!%p626_p8)
}
  0x6e   :  { %s630_s8 = scalar_lea.vmem %s90_s17, 16  ;;  %s634_s9 = scalar_lea.vmem %s90_s17, 32 }
  0x6f   :  { %p631_p9 = scmp.ne.s32.totalorder %s90_s17, %s630_s8  ;;  %p635_p10 = scmp.lt.s32.totalorder %s90_s17, %s90_s17 }
  0x70   :  { %p636_p11 = scmp.lt.s32.totalorder %s634_s9, %s630_s8 }
  0x72   :  { %p637_p12 = por %p636_p11, %p635_p10 }
  0x74   :  { %p638_p13 = pnand %p637_p12, %p631_p9 }
  0x76   :  { %641 = shalt.err (!%p638_p13)
}
  0x77   :  { %92 = dma.hbm_to_vmem [thread:$0]  %s844_s6, 16, %s90_s17, [#allocation12]  }
  0x78   :  { %664 = dma.done.wait [#allocation3], 128  }
  0x79   :  { %665 = vsyncadd [#allocation3], 4294967168 }
  0x7a   :  { %666 = dma.done.wait [#allocation6], 528  }
  0x7b   :  { %667 = vsyncadd [#allocation6], 4294966768 }
  0x7c   :  { %668 = dma.done.wait [#allocation9], 528  }
  0x7d   :  { %669 = vsyncadd [#allocation9], 4294966768 }
  0x7e   :  { %670 = dma.done.wait [#allocation12], 528  }
  0x7f   :  { %671 = vsyncadd [#allocation12], 4294966768  ;;  %v683_v0 = vmov 0.0|0.0   ;;  %vm684_vm0 = vmmov 0   ;;  %v685_v1 = vmov 0.0   ;;  %v115_v2 = vld [vmem:[#allocation5] sm:$0xff] }
  0x80   :  { %453 = vmatprep.subr.bf16.mxu0 %v683_v0  ;;  %428 = vmatprep.mubr.msk.f32.mxu0 %vm684_vm0, %v685_v1  ;;  %v116_v3 = vld [vmem:[#allocation5 + $0x8] sm:$0xff]  ;;  %v117_v4 = vld [vmem:[#allocation5 + $0x10] sm:$0xff]  ;;  %v118_v6 = vld [vmem:[#allocation5 + $0x18] sm:$0xff]  ;;  %vm126_vm1 = vcmask 261120   ;;  %s686_s6 = smov [#allocation14]  }
  0x81   :  { %459 = vmatprep.subr.bf16.mxu1 %v683_v0  ;;  %439 = vmatprep.mubr.msk.f32.mxu1 %vm684_vm0, %v685_v1  ;;  %v454_v5 = vpack.c.bf16 %v116_v3, %v115_v2  ;;  %v457_v7 = vpack.c.bf16 %v118_v6, %v117_v4  ;;  %v114_v8 = vld [vmem:[#allocation2] sm:$0xff]  ;;  %v205_v9 = vld [vmem:[#allocation8] sm:$0xff]  ;;  %v206_v10 = vld [vmem:[#allocation8 + $0x8] sm:$0xff]  ;;  %s385_s13 = sshll.u32 %s686_s6, 4  ;;  %s386_s13 = int_to_ptr.vmem [resolvable:$true] %s385_s13 }
  0x82   :  { %v207_v11 = vld [vmem:[#allocation8 + $0x10] sm:$0xff]  ;;  %v460_v12 = vpack.c.bf16 %v206_v10, %v205_v9  ;;  %v208_v13 = vld [vmem:[#allocation8 + $0x18] sm:$0xff]  ;;  %v294_v23 = vld [vmem:[#allocation11] sm:$0xff]  ;;  %s642_s0 = scalar_lea.vmem %s386_s13, 128  ;;  %p647_p1 = scmp.lt.s32.totalorder %s386_s13, %s386_s13 }
  0x83   :  { %455 = vmatpush3.bf16.msra.mxu0 %v454_v5  ;;  %v463_v14 = vpack.c.bf16 %v208_v13, %v207_v11  ;;  %v397_v15 = vld [vmem:[#allocation7] ss:$0 sm:$0xff]  ;;  %v295_v24 = vld [vmem:[#allocation11 + $0x8] sm:$0xff]  ;;  %v296_v26 = vld [vmem:[#allocation11 + $0x10] sm:$0xff]  ;;  %p643_p0 = scmp.ne.s32.totalorder %s386_s13, %s642_s0  ;;  %p648_p2 = scmp.lt.s32.totalorder %s642_s0, %s642_s0 }
  0x84   :  { %456 = vmatprep.subr.bf16.mxu0 %v683_v0  ;;  %461 = vmatpush3.bf16.msra.mxu1 %v460_v12  ;;  %v466_v25 = vpack.c.bf16 %v295_v24, %v294_v23  ;;  %v297_v27 = vld [vmem:[#allocation11 + $0x18] sm:$0xff]  ;;  %v403_v37 = vld [vmem:[#allocation13] ss:$0 sm:$0xff] }
  0x85   :  { %462 = vmatprep.subr.bf16.mxu1 %v683_v0  ;;  %v469_v28 = vpack.c.bf16 %v297_v27, %v296_v26  ;;  %v400_v29 = vld [vmem:[#allocation10] ss:$0 sm:$0xff]  ;;  %p649_p3 = por %p648_p2, %p647_p1 }
  0x87   :  { %458 = vmatpush3.bf16.msra.mxu0 %v457_v7  ;;  %p650_p4 = pnand %p649_p3, %p643_p0 }
  0x88   :  { %465 = vmatprep.subr.bf16.mxu0 %v683_v0  ;;  %464 = vmatpush3.bf16.msra.mxu1 %v463_v14 }
  0x8a   :  { %429 = vmatmul.mubr.msk.f32.vlgmr.msra.gmra.mrb[0].mxu0 %vm126_vm1, %v114_v8 }
  0x8b   :  { %450 = vmatprep.mubr.msk.f32.mxu0 %vm684_vm0, %v685_v1  ;;  %467 = vmatpush3.bf16.msra.mxu0 %v466_v25 }
  0x8c   :  { %468 = vmatprep.subr.bf16.mxu0 %v683_v0 }
  0x8f   :  { %470 = vmatpush3.bf16.msra.mxu0 %v469_v28 }
 0x15d   :  { %v196_v16 = vpop.f32.mrb[0].mxu0 }
 0x15e   :  { %v197_v17 = vadd.f32 %v397_v15, %v196_v16  ;;  %v430_v18 = vpop.f32.mrb[1].mxu0 }
 0x160   :  { %v201_v19 = vmul.f32 1.442695, %v197_v17  ;;  %vm200_vm2 = vcmp.gt.f32.partialorder %v197_v17, 0.0 }
 0x162   :  { %484 = vpow2.f32 %v201_v19 }
 0x16c   :  { %v485_v20 = vpop.eup %484 }
 0x16d   :  { %v399_v21 = vadd.f32 -1.0, %v485_v20 }
 0x16f   :  { %v204_v22 = vsel %vm200_vm2, %v197_v17, %v399_v21 }
 0x170   :  { %440 = vmatmul.mubr.msk.f32.vlgmr.msra.gmra.mrb[0].mxu1 %vm126_vm1, %v204_v22 }
 0x243   :  { %v285_v30 = vpop.f32.mrb[0].mxu1 }
 0x244   :  { %v286_v31 = vadd.f32 %v400_v29, %v285_v30  ;;  %v441_v32 = vpop.f32.mrb[1].mxu1 }
 0x246   :  { %v290_v33 = vmul.f32 1.442695, %v286_v31  ;;  %vm289_vm3 = vcmp.gt.f32.partialorder %v286_v31, 0.0 }
 0x248   :  { %486 = vpow2.f32 %v290_v33 }
 0x252   :  { %v487_v34 = vpop.eup %486 }
 0x253   :  { %v402_v35 = vadd.f32 -1.0, %v487_v34 }
 0x255   :  { %v293_v36 = vsel %vm289_vm3, %v286_v31, %v402_v35 }
 0x256   :  { %451 = vmatmul.mubr.msk.f32.vlgmr.msra.gmra.mrb[2].mxu0 %vm126_vm1, %v293_v36 }
 0x329   :  { %v374_v38 = vpop.f32.mrb[2].mxu0 }
 0x32a   :  { %v375_v39 = vadd.f32 %v403_v37, %v374_v38  ;;  %v452_v40 = vpop.f32.mrb[3].mxu0 }
 0x32c   :  { %378 = vst [vmem:[#allocation14] sm:$0xff] %v375_v39 }
 0x32d   :  { %653 = shalt.err (!%p650_p4)
}
 0x32e   :  { %s654_s15 = scalar_lea.hbm %s845_s7, 128 }
 0x32f   :  { %p655_p5 = scmp.ne.s32.totalorder %s845_s7, %s654_s15  ;;  %p658_p6 = scmp.lt.u32.totalorder %s654_s15, %s845_s7 }
 0x331   :  { %p660_p7 = pnand %p658_p6, %p655_p5 }
 0x333   :  { %663 = shalt.err (!%p660_p7)
}
 0x334   :  { %388 = dma.vmem_to_hbm [thread:$0]  %s386_s13, 128, %s845_s7, [#allocation4]  }
 0x335   :  { %672 = dma.done.wait [#allocation4], 128  }
 0x336   :  { %673 = vsyncadd [#allocation4], 4294967168 }
 0x337   :  { %392 = vsyncpa [#allocation3], 1 }
 0x338   :  { %393 = vsyncpa [#allocation6], 1 }
 0x339   :  { %394 = vsyncpa [#allocation9], 1 }
 0x33a   :  { %395 = vsyncpa [#allocation12], 1 }
 0x33b   :  { %396 = vsyncpa [#allocation4], 1 }

</bundles_post_ra>
